<compile_context>
chip_gen: v7x
topology: tpu7x:2x2x1
jax: 0.10.0
libtpu: 0.0.40
codegen_flags: <defaults>
</compile_context>

<pallas_src>
import functools

import jax
import jax.numpy as jnp
from jax.experimental import pallas as pl
from jax.experimental.pallas import tpu as pltpu


# ----------------------------------------------------------------------------
# Pallas kernel: fused input projection (prologue) + full LSTM recurrence +
# ReLU / Linear / Sigmoid head.  Single gridless invocation, all VMEM resident.
# ----------------------------------------------------------------------------
def lstm_head_kernel(xs_ref, wih_ref, b_ref, whh_ref, wfc_ref, bfc_ref, out_ref,
                     *, seq_len, batch):
    # xs_ref : (T*Bp, Dp)  bf16  -- time-major, batch/feature padded input sequence
    # wih_ref: (Dp, 4H)    bf16  -- fused input->gate weights (gate order i,f,g,o)
    # b_ref  : (1, 4H)     f32   -- combined LSTM bias (b_ih + b_hh)
    # whh_ref: (H, 4H)     bf16  -- fused hidden->gate weights
    # wfc_ref: (H, Op)     bf16  -- FC weights, zero-padded to 128 lanes
    # bfc_ref: (1, Op)     f32   -- FC bias, zero-padded
    # out_ref: (Bp, Op)    f32
    H = whh_ref.shape[0]

    # Prologue: one lane-dense MXU matmul for the whole sequence, bias folded in.
    xp = jnp.dot(xs_ref[...], wih_ref[...],
                 preferred_element_type=jnp.float32) + b_ref[...]   # (T*Bp, 4H) f32

    whh = whh_ref[...]                                               # (H, 4H) bf16

    h = jnp.zeros((batch, H), jnp.float32)
    c = jnp.zeros((batch, H), jnp.float32)

    # T is small and static: fully unrolled recurrence.  Per step: one bf16 MXU
    # matmul + 2 EUP transcendental passes over the full 128-lane gates vreg.
    for t in range(seq_len):
        gates = xp[t * batch:(t + 1) * batch, :] + jnp.dot(
            h.astype(jnp.bfloat16), whh, preferred_element_type=jnp.float32)
        sig = jax.nn.sigmoid(gates)      # one EUP pass over the whole (Bp,128) vreg
        tnh = jnp.tanh(gates)            # second EUP pass
        i_g = sig[:, 0 * H:1 * H]        # PyTorch LSTM gate order: i, f, g, o
        f_g = sig[:, 1 * H:2 * H]
        g_g = tnh[:, 2 * H:3 * H]
        o_g = sig[:, 3 * H:4 * H]
        c = f_g * c + i_g * g_g
        h = o_g * jnp.tanh(c)

    # Head: sigmoid(relu(h_T) @ W_fc + b_fc), lane-dense padded output block.
    relu = jnp.maximum(h, 0.0)
    fc = jnp.dot(relu.astype(jnp.bfloat16), wfc_ref[...],
                 preferred_element_type=jnp.float32) + bfc_ref[...]
    out_ref[...] = jax.nn.sigmoid(fc).astype(out_ref.dtype)


def lstm_head(xs2d, w_ih, b, w_hh, w_fc, b_fc, *, seq_len, batch):
    """xs2d: (T*Bp, Dp) bf16; w_ih: (Dp, 4H) bf16; b: (1, 4H) f32;
       w_hh: (H, 4H) bf16; w_fc: (H, Op) bf16; b_fc: (1, Op) f32.
       Returns (Bp, Op) f32 (caller slices the real batch / output lanes)."""
    TB, Dp = xs2d.shape
    H, G = w_hh.shape
    Op = w_fc.shape[-1]
    vmem = pl.BlockSpec(memory_space=pltpu.MemorySpace.VMEM)

    flops = (2 * TB * Dp * G                 # input projection
             + 2 * seq_len * batch * H * G   # recurrence matmuls
             + 2 * batch * H * Op)           # FC head
    transcendentals = seq_len * batch * (2 * G + H) + batch * Op
    bytes_accessed = (xs2d.size * 2 + w_ih.size * 2 + b.size * 4
                      + w_hh.size * 2 + w_fc.size * 2 + b_fc.size * 4
                      + batch * Op * 4)

    kernel = functools.partial(lstm_head_kernel, seq_len=seq_len, batch=batch)
    return pl.pallas_call(
        kernel,
        out_shape=jax.ShapeDtypeStruct((batch, Op), jnp.float32),
        in_specs=[vmem] * 6,
        out_specs=vmem,
        cost_estimate=pl.CostEstimate(flops=flops,
                                      transcendentals=transcendentals,
                                      bytes_accessed=bytes_accessed),
        compiler_params=pltpu.CompilerParams(vmem_limit_bytes=32 * 1024 * 1024),
    )(xs2d, w_ih, b, w_hh, w_fc, b_fc)


# ----------------------------------------------------------------------------
# Model wrapper: vectorized embedding gather + concat (XLA glue), padding/layout
# prep, single Pallas kernel call.
# ----------------------------------------------------------------------------
def my_rnn_forward(numeric_data, category_data, params, *,
                   num_numeric_features, window_size):
    """numeric_data: (B, window_size * num_numeric_features) f32.
       category_data: flat list (length window_size * num_cat_features) of (B, 1)
       int32 index arrays, ordered window-major then feature (matches the PyTorch
       forward's chunking of category_data)."""
    emb_tables = params["embeddings"]          # list of (vocab_j, dim_j)
    B = numeric_data.shape[0]
    T = window_size
    n = num_numeric_features
    F = len(emb_tables)

    numeric = numeric_data.reshape(B, T, n)                            # (B, T, n)

    # Vectorized embedding glue: one stack of all indices, one gather per table,
    # one concat along features.
    # Note: jnp.take clips out-of-range indices (PyTorch nn.Embedding would raise).
    cat_idx = jnp.stack([c[:, 0] for c in category_data], axis=1)      # (B, T*F)
    cat_idx = cat_idx.reshape(B, T, F)                                  # window-major
    emb_feats = [jnp.take(emb_tables[j], cat_idx[:, :, j], axis=0)      # (B, T, d_j)
                 for j in range(F)]
    x_seq = jnp.concatenate([numeric] + emb_feats, axis=-1)             # (B, T, D)

    H = params["w_hh"].shape[-1]
    O = params["w_fc"].shape[-1]
    D = x_seq.shape[-1]

    # Sublane / lane-friendly padding: batch -> multiple of 8, D and O -> 128.
    Bp = -(-B // 8) * 8
    Dp = -(-D // 128) * 128
    Op = -(-O // 128) * 128

    # Time-major, batch+feature padded, flattened to (T*Bp, Dp), bf16 MXU operand.
    xs = jnp.transpose(x_seq, (1, 0, 2))                                # (T, B, D)
    xs = jnp.pad(xs, ((0, 0), (0, Bp - B), (0, Dp - D)))
    xs2d = xs.reshape(T * Bp, Dp).astype(jnp.bfloat16)

    # Fuse per-gate weights into lane-dense (.., 4H) layouts (gate order i,f,g,o
    # preserved along the 4H axis); cast matmul operands to bf16.
    w_ih_all = jnp.transpose(params["w_ih"], (1, 0, 2)).reshape(D, 4 * H)
    w_ih_all = jnp.pad(w_ih_all, ((0, Dp - D), (0, 0))).astype(jnp.bfloat16)
    w_hh_all = jnp.transpose(params["w_hh"], (1, 0, 2)).reshape(H, 4 * H)
    w_hh_all = w_hh_all.astype(jnp.bfloat16)
    b_all = params["b"].reshape(1, 4 * H)                               # f32

    # Lane-dense FC head: pad to 128 output lanes, slice real lanes afterwards.
    w_fc = jnp.pad(params["w_fc"], ((0, 0), (0, Op - O))).astype(jnp.bfloat16)
    b_fc = jnp.pad(params["b_fc"], ((0, 0), (0, Op - O)))               # f32

    out = lstm_head(xs2d, w_ih_all, b_all, w_hh_all, w_fc, b_fc,
                    seq_len=T, batch=Bp)                                # (Bp, Op)
    return out[:B, :O]


# ----------------------------------------------------------------------------
# Pure-JAX reference that mirrors the kernel's numerics (bf16 MXU operands,
# f32 accumulation, f32 elementwise) but keeps the original per-gate layout so
# gate-packing / transpose bugs are caught at tight tolerance.
# ----------------------------------------------------------------------------
def ref_forward(x_seq, w_ih, w_hh, b, w_fc, b_fc):
    B, T, _ = x_seq.shape
    H = w_hh.shape[-1]
    w_ih_b = w_ih.astype(jnp.bfloat16)
    w_hh_b = w_hh.astype(jnp.bfloat16)
    h = jnp.zeros((B, H), jnp.float32)
    c = jnp.zeros((B, H), jnp.float32)
    for t in range(T):
        x_b = x_seq[:, t, :].astype(jnp.bfloat16)
        h_b = h.astype(jnp.bfloat16)
        pre = [jnp.dot(x_b, w_ih_b[g], preferred_element_type=jnp.float32)
               + jnp.dot(h_b, w_hh_b[g], preferred_element_type=jnp.float32)
               + b[g] for g in range(4)]
        i = jax.nn.sigmoid(pre[0])
        f = jax.nn.sigmoid(pre[1])
        g_ = jnp.tanh(pre[2])
        o = jax.nn.sigmoid(pre[3])
        c = f * c + i * g_
        h = o * jnp.tanh(c)
    relu = jnp.maximum(h, 0.0)
    fc = jnp.dot(relu.astype(jnp.bfloat16), w_fc.astype(jnp.bfloat16),
                 preferred_element_type=jnp.float32) + b_fc
    return jax.nn.sigmoid(fc)


# ----------------------------------------------------------------------------
if __name__ == "__main__":
    # Small, module-consistent shapes
    num_numeric_features = 3
    vocab_size = [5, 7]
    vector_size = [4, 6]
    hidden_size = 32              # 4H = 128 -> lane-dense fused gate matmul
    output_size = 2
    window_size = 8
    batch = 2
    d_in = num_numeric_features + sum(vector_size)

    key = jax.random.PRNGKey(0)
    keys = jax.random.split(key, 16)
    scale = 1.0 / jnp.sqrt(hidden_size)

    params = {
        "embeddings": [
            jax.random.normal(keys[j], (v, d), jnp.float32)
            for j, (v, d) in enumerate(zip(vocab_size, vector_size))
        ],
        # stacked per-gate weights, pre-transposed for x @ W:  gate order i, f, g, o
        "w_ih": jax.random.uniform(keys[4], (4, d_in, hidden_size),
                                   jnp.float32, -scale, scale),
        "w_hh": jax.random.uniform(keys[5], (4, hidden_size, hidden_size),
                                   jnp.float32, -scale, scale),
        # combined bias (b_ih + b_hh in PyTorch)
        "b": jax.random.uniform(keys[6], (4, 1, hidden_size),
                                jnp.float32, -scale, scale),
        "w_fc": jax.random.uniform(keys[7], (hidden_size, output_size),
                                   jnp.float32, -scale, scale),
        "b_fc": jax.random.uniform(keys[8], (1, output_size),
                                   jnp.float32, -scale, scale),
    }

    # Inputs
    numeric_data = jax.random.normal(
        keys[9], (batch, window_size * num_numeric_features), jnp.float32)
    cat_keys = jax.random.split(keys[10], window_size * len(vocab_size))
    category_data = []
    for w in range(window_size):
        for j, v in enumerate(vocab_size):
            category_data.append(
                jax.random.randint(cat_keys[w * len(vocab_size) + j],
                                   (batch, 1), 0, v, jnp.int32))

    fwd = functools.partial(my_rnn_forward,
                            num_numeric_features=num_numeric_features,
                            window_size=window_size)
    out = jax.block_until_ready(fwd(numeric_data, category_data, params))
    assert out.shape == (batch, output_size)

    # Sanity check vs. a per-gate reference that mirrors the bf16-operand MXU
    # numerics.  Tolerance 5e-3 (tightened from 1e-2): packing/ordering bugs give
    # errors ~0.1-0.5, while residual drift here is only f32-accumulation-order /
    # bf16 rounding noise (typically <1e-4).
    numeric = numeric_data.reshape(batch, window_size, num_numeric_features)
    feats = []
    for w in range(window_size):
        parts = [numeric[:, w, :]]
        for j in range(len(vocab_size)):
            idx = category_data[w * len(vocab_size) + j][:, 0]
            parts.append(jnp.take(params["embeddings"][j], idx, axis=0))
        feats.append(jnp.concatenate(parts, axis=-1))
    x_seq = jnp.stack(feats, axis=1)
    ref = ref_forward(x_seq, params["w_ih"], params["w_hh"], params["b"],
                      params["w_fc"], params["b_fc"])
    assert jnp.allclose(out, ref, atol=5e-3, rtol=5e-3)

    print("KERNEL_OK")
</pallas_src>

<mosaic_0001>
module attributes {stable_mosaic.version = 11 : i64} {
  func.func @lstm_head_kernel(%arg0: memref<64x128xbf16, #tpu.memory_space<vmem>>, %arg1: memref<128x128xbf16, #tpu.memory_space<vmem>>, %arg2: memref<1x128xf32, #tpu.memory_space<vmem>>, %arg3: memref<32x128xbf16, #tpu.memory_space<vmem>>, %arg4: memref<32x128xbf16, #tpu.memory_space<vmem>>, %arg5: memref<1x128xf32, #tpu.memory_space<vmem>>, %arg6: memref<8x128xf32, #tpu.memory_space<vmem>>) attributes {dimension_semantics = [], scalar_prefetch = 0 : i64, scratch_operands = 0 : i64, tpu.core_type = #tpu.core_type<tc>} {
    %c0 = arith.constant 0 : index
    %c0_0 = arith.constant 0 : index
    %0 = vector.load %arg0[%c0, %c0_0] : memref<64x128xbf16, #tpu.memory_space<vmem>>, vector<64x128xbf16>
    %c0_1 = arith.constant 0 : index
    %c0_2 = arith.constant 0 : index
    %1 = vector.load %arg1[%c0_1, %c0_2] : memref<128x128xbf16, #tpu.memory_space<vmem>>, vector<128x128xbf16>
    %cst = arith.constant dense<0.000000e+00> : vector<64x128xf32>
    %2 = tpu.matmul %0, %1, %cst {dimension_numbers = #tpu.dot_dimension_numbers<[1], [0], [0], [1], [0, 0, 1, 1], [], []>} : vector<64x128xbf16>, vector<128x128xbf16>, vector<64x128xf32> -> vector<64x128xf32>
    %c0_3 = arith.constant 0 : index
    %c0_4 = arith.constant 0 : index
    %3 = vector.load %arg2[%c0_3, %c0_4] : memref<1x128xf32, #tpu.memory_space<vmem>>, vector<1x128xf32>
    %4 = vector.broadcast %3 : vector<1x128xf32> to vector<64x128xf32>
    %5 = arith.addf %2, %4 : vector<64x128xf32>
    %c0_5 = arith.constant 0 : index
    %c0_6 = arith.constant 0 : index
    %6 = vector.load %arg3[%c0_5, %c0_6] : memref<32x128xbf16, #tpu.memory_space<vmem>>, vector<32x128xbf16>
    %cst_7 = arith.constant 0.000000e+00 : f32
    %7 = vector.broadcast %cst_7 : f32 to vector<8x32xf32>
    %cst_8 = arith.constant 0.000000e+00 : f32
    %8 = vector.broadcast %cst_8 : f32 to vector<8x32xf32>
    %9 = vector.extract_strided_slice %5 {offsets = [0, 0], sizes = [8, 128], strides = [1, 1]} : vector<64x128xf32> to vector<8x128xf32>
    %10 = arith.truncf %7 : vector<8x32xf32> to vector<8x32xbf16>
    %cst_9 = arith.constant dense<0.000000e+00> : vector<8x128xf32>
    %11 = tpu.matmul %10, %6, %cst_9 {dimension_numbers = #tpu.dot_dimension_numbers<[1], [0], [0], [1], [0, 0, 1, 1], [], []>} : vector<8x32xbf16>, vector<32x128xbf16>, vector<8x128xf32> -> vector<8x128xf32>
    %12 = arith.addf %9, %11 : vector<8x128xf32>
    %13 = arith.negf %12 : vector<8x128xf32>
    %14 = math.exp %13 : vector<8x128xf32>
    %cst_10 = arith.constant 1.000000e+00 : f32
    %15 = vector.broadcast %cst_10 : f32 to vector<8x128xf32>
    %16 = arith.addf %15, %14 : vector<8x128xf32>
    %17 = arith.divf %15, %16 : vector<8x128xf32>
    %18 = math.tanh %12 : vector<8x128xf32>
    %19 = vector.extract_strided_slice %17 {offsets = [0, 0], sizes = [8, 32], strides = [1, 1]} : vector<8x128xf32> to vector<8x32xf32>
    %20 = vector.extract_strided_slice %17 {offsets = [0, 32], sizes = [8, 32], strides = [1, 1]} : vector<8x128xf32> to vector<8x32xf32>
    %21 = vector.extract_strided_slice %18 {offsets = [0, 64], sizes = [8, 32], strides = [1, 1]} : vector<8x128xf32> to vector<8x32xf32>
    %22 = vector.extract_strided_slice %17 {offsets = [0, 96], sizes = [8, 32], strides = [1, 1]} : vector<8x128xf32> to vector<8x32xf32>
    %23 = arith.mulf %20, %8 : vector<8x32xf32>
    %24 = arith.mulf %19, %21 : vector<8x32xf32>
    %25 = arith.addf %23, %24 : vector<8x32xf32>
    %26 = math.tanh %25 : vector<8x32xf32>
    %27 = arith.mulf %22, %26 : vector<8x32xf32>
    %28 = vector.extract_strided_slice %5 {offsets = [8, 0], sizes = [8, 128], strides = [1, 1]} : vector<64x128xf32> to vector<8x128xf32>
    %29 = arith.truncf %27 : vector<8x32xf32> to vector<8x32xbf16>
    %cst_11 = arith.constant dense<0.000000e+00> : vector<8x128xf32>
    %30 = tpu.matmul %29, %6, %cst_11 {dimension_numbers = #tpu.dot_dimension_numbers<[1], [0], [0], [1], [0, 0, 1, 1], [], []>} : vector<8x32xbf16>, vector<32x128xbf16>, vector<8x128xf32> -> vector<8x128xf32>
    %31 = arith.addf %28, %30 : vector<8x128xf32>
    %32 = arith.negf %31 : vector<8x128xf32>
    %33 = math.exp %32 : vector<8x128xf32>
    %cst_12 = arith.constant 1.000000e+00 : f32
    %34 = vector.broadcast %cst_12 : f32 to vector<8x128xf32>
    %35 = arith.addf %34, %33 : vector<8x128xf32>
    %36 = arith.divf %34, %35 : vector<8x128xf32>
    %37 = math.tanh %31 : vector<8x128xf32>
    %38 = vector.extract_strided_slice %36 {offsets = [0, 0], sizes = [8, 32], strides = [1, 1]} : vector<8x128xf32> to vector<8x32xf32>
    %39 = vector.extract_strided_slice %36 {offsets = [0, 32], sizes = [8, 32], strides = [1, 1]} : vector<8x128xf32> to vector<8x32xf32>
    %40 = vector.extract_strided_slice %37 {offsets = [0, 64], sizes = [8, 32], strides = [1, 1]} : vector<8x128xf32> to vector<8x32xf32>
    %41 = vector.extract_strided_slice %36 {offsets = [0, 96], sizes = [8, 32], strides = [1, 1]} : vector<8x128xf32> to vector<8x32xf32>
    %42 = arith.mulf %39, %25 : vector<8x32xf32>
    %43 = arith.mulf %38, %40 : vector<8x32xf32>
    %44 = arith.addf %42, %43 : vector<8x32xf32>
    %45 = math.tanh %44 : vector<8x32xf32>
    %46 = arith.mulf %41, %45 : vector<8x32xf32>
    %47 = vector.extract_strided_slice %5 {offsets = [16, 0], sizes = [8, 128], strides = [1, 1]} : vector<64x128xf32> to vector<8x128xf32>
    %48 = arith.truncf %46 : vector<8x32xf32> to vector<8x32xbf16>
    %cst_13 = arith.constant dense<0.000000e+00> : vector<8x128xf32>
    %49 = tpu.matmul %48, %6, %cst_13 {dimension_numbers = #tpu.dot_dimension_numbers<[1], [0], [0], [1], [0, 0, 1, 1], [], []>} : vector<8x32xbf16>, vector<32x128xbf16>, vector<8x128xf32> -> vector<8x128xf32>
    %50 = arith.addf %47, %49 : vector<8x128xf32>
    %51 = arith.negf %50 : vector<8x128xf32>
    %52 = math.exp %51 : vector<8x128xf32>
    %cst_14 = arith.constant 1.000000e+00 : f32
    %53 = vector.broadcast %cst_14 : f32 to vector<8x128xf32>
    %54 = arith.addf %53, %52 : vector<8x128xf32>
    %55 = arith.divf %53, %54 : vector<8x128xf32>
    %56 = math.tanh %50 : vector<8x128xf32>
    %57 = vector.extract_strided_slice %55 {offsets = [0, 0], sizes = [8, 32], strides = [1, 1]} : vector<8x128xf32> to vector<8x32xf32>
    %58 = vector.extract_strided_slice %55 {offsets = [0, 32], sizes = [8, 32], strides = [1, 1]} : vector<8x128xf32> to vector<8x32xf32>
    %59 = vector.extract_strided_slice %56 {offsets = [0, 64], sizes = [8, 32], strides = [1, 1]} : vector<8x128xf32> to vector<8x32xf32>
    %60 = vector.extract_strided_slice %55 {offsets = [0, 96], sizes = [8, 32], strides = [1, 1]} : vector<8x128xf32> to vector<8x32xf32>
    %61 = arith.mulf %58, %44 : vector<8x32xf32>
    %62 = arith.mulf %57, %59 : vector<8x32xf32>
    %63 = arith.addf %61, %62 : vector<8x32xf32>
    %64 = math.tanh %63 : vector<8x32xf32>
    %65 = arith.mulf %60, %64 : vector<8x32xf32>
    %66 = vector.extract_strided_slice %5 {offsets = [24, 0], sizes = [8, 128], strides = [1, 1]} : vector<64x128xf32> to vector<8x128xf32>
    %67 = arith.truncf %65 : vector<8x32xf32> to vector<8x32xbf16>
    %cst_15 = arith.constant dense<0.000000e+00> : vector<8x128xf32>
    %68 = tpu.matmul %67, %6, %cst_15 {dimension_numbers = #tpu.dot_dimension_numbers<[1], [0], [0], [1], [0, 0, 1, 1], [], []>} : vector<8x32xbf16>, vector<32x128xbf16>, vector<8x128xf32> -> vector<8x128xf32>
    %69 = arith.addf %66, %68 : vector<8x128xf32>
    %70 = arith.negf %69 : vector<8x128xf32>
    %71 = math.exp %70 : vector<8x128xf32>
    %cst_16 = arith.constant 1.000000e+00 : f32
    %72 = vector.broadcast %cst_16 : f32 to vector<8x128xf32>
    %73 = arith.addf %72, %71 : vector<8x128xf32>
    %74 = arith.divf %72, %73 : vector<8x128xf32>
    %75 = math.tanh %69 : vector<8x128xf32>
    %76 = vector.extract_strided_slice %74 {offsets = [0, 0], sizes = [8, 32], strides = [1, 1]} : vector<8x128xf32> to vector<8x32xf32>
    %77 = vector.extract_strided_slice %74 {offsets = [0, 32], sizes = [8, 32], strides = [1, 1]} : vector<8x128xf32> to vector<8x32xf32>
    %78 = vector.extract_strided_slice %75 {offsets = [0, 64], sizes = [8, 32], strides = [1, 1]} : vector<8x128xf32> to vector<8x32xf32>
    %79 = vector.extract_strided_slice %74 {offsets = [0, 96], sizes = [8, 32], strides = [1, 1]} : vector<8x128xf32> to vector<8x32xf32>
    %80 = arith.mulf %77, %63 : vector<8x32xf32>
    %81 = arith.mulf %76, %78 : vector<8x32xf32>
    %82 = arith.addf %80, %81 : vector<8x32xf32>
    %83 = math.tanh %82 : vector<8x32xf32>
    %84 = arith.mulf %79, %83 : vector<8x32xf32>
    %85 = vector.extract_strided_slice %5 {offsets = [32, 0], sizes = [8, 128], strides = [1, 1]} : vector<64x128xf32> to vector<8x128xf32>
    %86 = arith.truncf %84 : vector<8x32xf32> to vector<8x32xbf16>
    %cst_17 = arith.constant dense<0.000000e+00> : vector<8x128xf32>
    %87 = tpu.matmul %86, %6, %cst_17 {dimension_numbers = #tpu.dot_dimension_numbers<[1], [0], [0], [1], [0, 0, 1, 1], [], []>} : vector<8x32xbf16>, vector<32x128xbf16>, vector<8x128xf32> -> vector<8x128xf32>
    %88 = arith.addf %85, %87 : vector<8x128xf32>
    %89 = arith.negf %88 : vector<8x128xf32>
    %90 = math.exp %89 : vector<8x128xf32>
    %cst_18 = arith.constant 1.000000e+00 : f32
    %91 = vector.broadcast %cst_18 : f32 to vector<8x128xf32>
    %92 = arith.addf %91, %90 : vector<8x128xf32>
    %93 = arith.divf %91, %92 : vector<8x128xf32>
    %94 = math.tanh %88 : vector<8x128xf32>
    %95 = vector.extract_strided_slice %93 {offsets = [0, 0], sizes = [8, 32], strides = [1, 1]} : vector<8x128xf32> to vector<8x32xf32>
    %96 = vector.extract_strided_slice %93 {offsets = [0, 32], sizes = [8, 32], strides = [1, 1]} : vector<8x128xf32> to vector<8x32xf32>
    %97 = vector.extract_strided_slice %94 {offsets = [0, 64], sizes = [8, 32], strides = [1, 1]} : vector<8x128xf32> to vector<8x32xf32>
    %98 = vector.extract_strided_slice %93 {offsets = [0, 96], sizes = [8, 32], strides = [1, 1]} : vector<8x128xf32> to vector<8x32xf32>
    %99 = arith.mulf %96, %82 : vector<8x32xf32>
    %100 = arith.mulf %95, %97 : vector<8x32xf32>
    %101 = arith.addf %99, %100 : vector<8x32xf32>
    %102 = math.tanh %101 : vector<8x32xf32>
    %103 = arith.mulf %98, %102 : vector<8x32xf32>
    %104 = vector.extract_strided_slice %5 {offsets = [40, 0], sizes = [8, 128], strides = [1, 1]} : vector<64x128xf32> to vector<8x128xf32>
    %105 = arith.truncf %103 : vector<8x32xf32> to vector<8x32xbf16>
    %cst_19 = arith.constant dense<0.000000e+00> : vector<8x128xf32>
    %106 = tpu.matmul %105, %6, %cst_19 {dimension_numbers = #tpu.dot_dimension_numbers<[1], [0], [0], [1], [0, 0, 1, 1], [], []>} : vector<8x32xbf16>, vector<32x128xbf16>, vector<8x128xf32> -> vector<8x128xf32>
    %107 = arith.addf %104, %106 : vector<8x128xf32>
    %108 = arith.negf %107 : vector<8x128xf32>
    %109 = math.exp %108 : vector<8x128xf32>
    %cst_20 = arith.constant 1.000000e+00 : f32
    %110 = vector.broadcast %cst_20 : f32 to vector<8x128xf32>
    %111 = arith.addf %110, %109 : vector<8x128xf32>
    %112 = arith.divf %110, %111 : vector<8x128xf32>
    %113 = math.tanh %107 : vector<8x128xf32>
    %114 = vector.extract_strided_slice %112 {offsets = [0, 0], sizes = [8, 32], strides = [1, 1]} : vector<8x128xf32> to vector<8x32xf32>
    %115 = vector.extract_strided_slice %112 {offsets = [0, 32], sizes = [8, 32], strides = [1, 1]} : vector<8x128xf32> to vector<8x32xf32>
    %116 = vector.extract_strided_slice %113 {offsets = [0, 64], sizes = [8, 32], strides = [1, 1]} : vector<8x128xf32> to vector<8x32xf32>
    %117 = vector.extract_strided_slice %112 {offsets = [0, 96], sizes = [8, 32], strides = [1, 1]} : vector<8x128xf32> to vector<8x32xf32>
    %118 = arith.mulf %115, %101 : vector<8x32xf32>
    %119 = arith.mulf %114, %116 : vector<8x32xf32>
    %120 = arith.addf %118, %119 : vector<8x32xf32>
    %121 = math.tanh %120 : vector<8x32xf32>
    %122 = arith.mulf %117, %121 : vector<8x32xf32>
    %123 = vector.extract_strided_slice %5 {offsets = [48, 0], sizes = [8, 128], strides = [1, 1]} : vector<64x128xf32> to vector<8x128xf32>
    %124 = arith.truncf %122 : vector<8x32xf32> to vector<8x32xbf16>
    %cst_21 = arith.constant dense<0.000000e+00> : vector<8x128xf32>
    %125 = tpu.matmul %124, %6, %cst_21 {dimension_numbers = #tpu.dot_dimension_numbers<[1], [0], [0], [1], [0, 0, 1, 1], [], []>} : vector<8x32xbf16>, vector<32x128xbf16>, vector<8x128xf32> -> vector<8x128xf32>
    %126 = arith.addf %123, %125 : vector<8x128xf32>
    %127 = arith.negf %126 : vector<8x128xf32>
    %128 = math.exp %127 : vector<8x128xf32>
    %cst_22 = arith.constant 1.000000e+00 : f32
    %129 = vector.broadcast %cst_22 : f32 to vector<8x128xf32>
    %130 = arith.addf %129, %128 : vector<8x128xf32>
    %131 = arith.divf %129, %130 : vector<8x128xf32>
    %132 = math.tanh %126 : vector<8x128xf32>
    %133 = vector.extract_strided_slice %131 {offsets = [0, 0], sizes = [8, 32], strides = [1, 1]} : vector<8x128xf32> to vector<8x32xf32>
    %134 = vector.extract_strided_slice %131 {offsets = [0, 32], sizes = [8, 32], strides = [1, 1]} : vector<8x128xf32> to vector<8x32xf32>
    %135 = vector.extract_strided_slice %132 {offsets = [0, 64], sizes = [8, 32], strides = [1, 1]} : vector<8x128xf32> to vector<8x32xf32>
    %136 = vector.extract_strided_slice %131 {offsets = [0, 96], sizes = [8, 32], strides = [1, 1]} : vector<8x128xf32> to vector<8x32xf32>
    %137 = arith.mulf %134, %120 : vector<8x32xf32>
    %138 = arith.mulf %133, %135 : vector<8x32xf32>
    %139 = arith.addf %137, %138 : vector<8x32xf32>
    %140 = math.tanh %139 : vector<8x32xf32>
    %141 = arith.mulf %136, %140 : vector<8x32xf32>
    %142 = vector.extract_strided_slice %5 {offsets = [56, 0], sizes = [8, 128], strides = [1, 1]} : vector<64x128xf32> to vector<8x128xf32>
    %143 = arith.truncf %141 : vector<8x32xf32> to vector<8x32xbf16>
    %cst_23 = arith.constant dense<0.000000e+00> : vector<8x128xf32>
    %144 = tpu.matmul %143, %6, %cst_23 {dimension_numbers = #tpu.dot_dimension_numbers<[1], [0], [0], [1], [0, 0, 1, 1], [], []>} : vector<8x32xbf16>, vector<32x128xbf16>, vector<8x128xf32> -> vector<8x128xf32>
    %145 = arith.addf %142, %144 : vector<8x128xf32>
    %146 = arith.negf %145 : vector<8x128xf32>
    %147 = math.exp %146 : vector<8x128xf32>
    %cst_24 = arith.constant 1.000000e+00 : f32
    %148 = vector.broadcast %cst_24 : f32 to vector<8x128xf32>
    %149 = arith.addf %148, %147 : vector<8x128xf32>
    %150 = arith.divf %148, %149 : vector<8x128xf32>
    %151 = math.tanh %145 : vector<8x128xf32>
    %152 = vector.extract_strided_slice %150 {offsets = [0, 0], sizes = [8, 32], strides = [1, 1]} : vector<8x128xf32> to vector<8x32xf32>
    %153 = vector.extract_strided_slice %150 {offsets = [0, 32], sizes = [8, 32], strides = [1, 1]} : vector<8x128xf32> to vector<8x32xf32>
    %154 = vector.extract_strided_slice %151 {offsets = [0, 64], sizes = [8, 32], strides = [1, 1]} : vector<8x128xf32> to vector<8x32xf32>
    %155 = vector.extract_strided_slice %150 {offsets = [0, 96], sizes = [8, 32], strides = [1, 1]} : vector<8x128xf32> to vector<8x32xf32>
    %156 = arith.mulf %153, %139 : vector<8x32xf32>
    %157 = arith.mulf %152, %154 : vector<8x32xf32>
    %158 = arith.addf %156, %157 : vector<8x32xf32>
    %159 = math.tanh %158 : vector<8x32xf32>
    %160 = arith.mulf %155, %159 : vector<8x32xf32>
    %cst_25 = arith.constant 0.000000e+00 : f32
    %161 = vector.broadcast %cst_25 : f32 to vector<8x32xf32>
    %162 = arith.maximumf %160, %161 : vector<8x32xf32>
    %163 = arith.truncf %162 : vector<8x32xf32> to vector<8x32xbf16>
    %c0_26 = arith.constant 0 : index
    %c0_27 = arith.constant 0 : index
    %164 = vector.load %arg4[%c0_26, %c0_27] : memref<32x128xbf16, #tpu.memory_space<vmem>>, vector<32x128xbf16>
    %cst_28 = arith.constant dense<0.000000e+00> : vector<8x128xf32>
    %165 = tpu.matmul %163, %164, %cst_28 {dimension_numbers = #tpu.dot_dimension_numbers<[1], [0], [0], [1], [0, 0, 1, 1], [], []>} : vector<8x32xbf16>, vector<32x128xbf16>, vector<8x128xf32> -> vector<8x128xf32>
    %c0_29 = arith.constant 0 : index
    %c0_30 = arith.constant 0 : index
    %166 = vector.load %arg5[%c0_29, %c0_30] : memref<1x128xf32, #tpu.memory_space<vmem>>, vector<1x128xf32>
    %167 = vector.broadcast %166 : vector<1x128xf32> to vector<8x128xf32>
    %168 = arith.addf %165, %167 : vector<8x128xf32>
    %169 = arith.negf %168 : vector<8x128xf32>
    %170 = math.exp %169 : vector<8x128xf32>
    %cst_31 = arith.constant 1.000000e+00 : f32
    %171 = vector.broadcast %cst_31 : f32 to vector<8x128xf32>
    %172 = arith.addf %171, %170 : vector<8x128xf32>
    %173 = arith.divf %171, %172 : vector<8x128xf32>
    %c0_32 = arith.constant 0 : index
    %c0_33 = arith.constant 0 : index
    %174 = vector.load %arg6[%c0_32, %c0_33] : memref<8x128xf32, #tpu.memory_space<vmem>>, vector<8x128xf32>
    tpu.vector_store %arg6[%c0_32, %c0_33], %173 {strides = array<i32>} : memref<8x128xf32, #tpu.memory_space<vmem>>, vector<8x128xf32>,
    return
  }
}

</mosaic_0001>

<bundles_post_ra>
// kernel: tpu_custom_call.1
= control target key start
LH: loop header
LB: loop body
LE: loop exit
PB: predicated region body
PF: predicated region fallthrough
CT: control target
= control target key end

     0   :  { %11 = vsyncpa [#allocation3], 0  ;;  %s1571_s0 = inlined_call_operand.hbm [shape: bf16[64,128], index: 0, kind: input, shape index: {}]   ;;  %s1572_s1 = inlined_call_operand.hbm [shape: bf16[128,128], index: 1, kind: input, shape index: {}]   ;;  %s1573_s2 = inlined_call_operand.vmem [shape: f32[1,128], index: 2, kind: input, shape index: {}]   ;;  %s1574_s3 = inlined_call_operand.hbm [shape: bf16[32,128], index: 3, kind: input, shape index: {}]   ;;  %s1575_s4 = inlined_call_operand.hbm [shape: bf16[32,128], index: 4, kind: input, shape index: {}]   ;;  %s1576_s5 = inlined_call_operand.vmem [shape: f32[1,128], index: 5, kind: input, shape index: {}]   ;;  %s1577_s6 = inlined_call_operand.hbm [shape: f32[8,128], index: 6, kind: output, shape index: {}]  }
   0x1   :  { %12 = vsyncpa [#allocation6], 0 }
   0x2   :  { %13 = vsyncpa [#allocation9], 0 }
   0x3   :  { %14 = vsyncpa [#allocation4], 0  ;;  %s1315_s21 = smov [#allocation5]   ;;  %s1316_s23 = smov [#allocation2]  }
   0x4   :  { %s32_s22 = sshll.u32 %s1315_s21, 4  ;;  %s20_s24 = sshll.u32 %s1316_s23, 4  ;;  %s33_s22 = int_to_ptr.vmem [resolvable:$true] %s32_s22  ;;  %s1361_s24 = int_to_ptr.vmem [resolvable:$true] %s20_s24 }
   0x5   :  { %s1197_s27 = scalar_lea.hbm %s1572_s1, 1024 }
   0x6   :  { %p1198_p0 = scmp.ne.s32.totalorder %s1572_s1, %s1197_s27  ;;  %p1201_p1 = scmp.lt.u32.totalorder %s1197_s27, %s1572_s1 }
   0x8   :  { %p1203_p2 = pnand %p1201_p1, %p1198_p0 }
   0xa   :  { %1206 = shalt.err (!%p1203_p2)
}
   0xb   :  { %s1207_s8 = scalar_lea.vmem %s33_s22, 1024  ;;  %p1212_p4 = scmp.lt.s32.totalorder %s33_s22, %s33_s22 }
   0xc   :  { %p1208_p3 = scmp.ne.s32.totalorder %s33_s22, %s1207_s8  ;;  %p1213_p5 = scmp.lt.s32.totalorder %s1207_s8, %s1207_s8 }
   0xe   :  { %p1214_p6 = por %p1213_p5, %p1212_p4 }
  0x10   :  { %p1215_p7 = pnand %p1214_p6, %p1208_p3 }
  0x12   :  { %1218 = shalt.err (!%p1215_p7)
}
  0x13   :  { %s1317_s9 = smov 64   ;;  %s1318_s10 = smov 4  }
  0x14   :  { %38 = dma.hbm_to_vmem [thread:$0]  %s1572_s1, 1024, %s33_s22, [#allocation6], %s1317_s9, %s1317_s9, %s1318_s10  }
  0x15   :  { %s1219_s15 = scalar_lea.hbm %s1571_s0, 512 }
  0x16   :  { %p1220_p8 = scmp.ne.s32.totalorder %s1571_s0, %s1219_s15  ;;  %p1223_p9 = scmp.lt.u32.totalorder %s1219_s15, %s1571_s0 }
  0x18   :  { %p1225_p10 = pnand %p1223_p9, %p1220_p8 }
  0x1a   :  { %1228 = shalt.err (!%p1225_p10)
}
  0x1b   :  { %s1229_s20 = scalar_lea.vmem %s1361_s24, 512  ;;  %p1234_p12 = scmp.lt.s32.totalorder %s1361_s24, %s1361_s24 }
  0x1c   :  { %p1230_p11 = scmp.ne.s32.totalorder %s1361_s24, %s1229_s20  ;;  %p1235_p13 = scmp.lt.s32.totalorder %s1229_s20, %s1229_s20 }
  0x1e   :  { %p1236_p0 = por %p1235_p13, %p1234_p12 }
  0x20   :  { %p1237_p1 = pnand %p1236_p0, %p1230_p11 }
  0x22   :  { %1240 = shalt.err (!%p1237_p1)
}
  0x23   :  { %26 = dma.hbm_to_vmem [thread:$0]  %s1571_s0, 512, %s1361_s24, [#allocation3], %s1317_s9, %s1317_s9, %s1318_s10  }
  0x24   :  { %s1319_s22 = smov [#allocation7]   ;;  %s1320_s25 = smov [#allocation8]  }
  0x25   :  { %s46_s23 = sshll.u32 %s1319_s22, 4  ;;  %s58_s26 = sshll.u32 %s1320_s25, 4  ;;  %s47_s23 = int_to_ptr.vmem [resolvable:$true] %s46_s23  ;;  %s1398_s26 = int_to_ptr.vmem [resolvable:$true] %s58_s26 }
  0x26   :  { %s1241_s29 = scalar_lea.hbm %s1574_s3, 256 }
  0x27   :  { %p1242_p2 = scmp.ne.s32.totalorder %s1574_s3, %s1241_s29  ;;  %p1245_p3 = scmp.lt.u32.totalorder %s1241_s29, %s1574_s3 }
  0x29   :  { %p1247_p4 = pnand %p1245_p3, %p1242_p2 }
  0x2b   :  { %1250 = shalt.err (!%p1247_p4)
}
  0x2c   :  { %s1251_s0 = scalar_lea.vmem %s47_s23, 256  ;;  %p1256_p6 = scmp.lt.s32.totalorder %s47_s23, %s47_s23 }
  0x2d   :  { %p1252_p5 = scmp.ne.s32.totalorder %s47_s23, %s1251_s0  ;;  %p1257_p7 = scmp.lt.s32.totalorder %s1251_s0, %s1251_s0 }
  0x2f   :  { %p1258_p8 = por %p1257_p7, %p1256_p6 }
  0x31   :  { %p1259_p9 = pnand %p1258_p8, %p1252_p5 }
  0x33   :  { %1262 = shalt.err (!%p1259_p9)
}
  0x34   :  { %52 = dma.hbm_to_vmem [thread:$0]  %s1574_s3, 256, %s47_s23, [#allocation6], %s1317_s9, %s1317_s9, %s1318_s10  }
  0x35   :  { %s1263_s15 = scalar_lea.hbm %s1575_s4, 256 }
  0x36   :  { %p1264_p10 = scmp.ne.s32.totalorder %s1575_s4, %s1263_s15  ;;  %p1267_p11 = scmp.lt.u32.totalorder %s1263_s15, %s1575_s4 }
  0x38   :  { %p1269_p12 = pnand %p1267_p11, %p1264_p10 }
  0x3a   :  { %1272 = shalt.err (!%p1269_p12)
}
  0x3b   :  { %s1273_s20 = scalar_lea.vmem %s1398_s26, 256  ;;  %p1278_p0 = scmp.lt.s32.totalorder %s1398_s26, %s1398_s26 }
  0x3c   :  { %p1274_p13 = scmp.ne.s32.totalorder %s1398_s26, %s1273_s20  ;;  %p1279_p1 = scmp.lt.s32.totalorder %s1273_s20, %s1273_s20 }
  0x3e   :  { %p1280_p2 = por %p1279_p1, %p1278_p0 }
  0x40   :  { %p1281_p3 = pnand %p1280_p2, %p1274_p13 }
  0x42   :  { %1284 = shalt.err (!%p1281_p3)
}
  0x43   :  { %64 = dma.hbm_to_vmem [thread:$0]  %s1575_s4, 256, %s1398_s26, [#allocation9], %s1317_s9, %s1317_s9, %s1318_s10  }
  0x44   :  { %1307 = dma.done.wait [#allocation3], 512  }
  0x45   :  { %1308 = vsyncadd [#allocation3], 4294966784 }
  0x46   :  { %1309 = dma.done.wait [#allocation6], 1280  }
  0x47   :  { %1310 = vsyncadd [#allocation6], 4294966016 }
  0x48   :  { %1311 = dma.done.wait [#allocation9], 256  }
  0x49   :  { %1312 = vsyncadd [#allocation9], 4294967040  ;;  %v1321_v0 = vmov 0.0   ;;  %vm1322_vm0 = vmmov 0   ;;  %v1113_v1 = vld [vmem:[#allocation5] sm:$0xff]   ;;  %v1114_v2 = vld [vmem:[#allocation5 + $0x8] sm:$0xff]  }
  0x4a   :  { %1030 = vmatprep.subr.bf16.mxu1 %v1321_v0  ;;  %1034 = vmatprep.mubr.msk.bf16.mxu1 %vm1322_vm0, %v1321_v0  ;;  %v1115_v3 = vld [vmem:[#allocation5 + $0x10] sm:$0xff]   ;;  %v1438_v4 = vld [vmem:[#allocation7] sm:$0xff]   ;;  %v1116_v5 = vld [vmem:[#allocation5 + $0x18] sm:$0xff]   ;;  %v1323_v10 = vmov 0   ;;  %vm264_vm1 = vcmask 261120  }
  0x4b   :  { %1006 = vmatprep.subr.bf16.mxu0 %v1113_v1  ;;  %1031 = vmatpush3.bf16.msra.mxu1 %v1438_v4  ;;  %v1441_v6 = vld [vmem:[#allocation7 + $0x8] sm:$0xff]   ;;  %v1123_v7 = vld [vmem:[#allocation2] sm:$0xff]   ;;  %v1119_v11 = vld [vmem:[#allocation5 + $0x30] sm:$0xff]  }
  0x4c   :  { %1007 = vmatpush3.bf16.msra.mxu0 %v1113_v1  ;;  %1032 = vmatprep.subr.bf16.mxu1 %v1321_v0  ;;  %v1117_v8 = vld [vmem:[#allocation5 + $0x20] sm:$0xff]   ;;  %v1118_v9 = vld [vmem:[#allocation5 + $0x28] sm:$0xff]   ;;  %v1121_v12 = vld [vmem:[#allocation5 + $0x38] sm:$0xff]  }
  0x4d   :  { %1008 = vmatprep.subr.bf16.mxu0 %v1114_v2  ;;  %1022 = vmatprep.mubr.bf16.mxu0 %v1123_v7  ;;  %v1124_v13 = vld [vmem:[#allocation2 + $0x8] sm:$0xff]   ;;  %v1460_v18 = vld [vmem:[%s1573_s2] ss:$0 sm:$0xff]  ;;  %s1324_s2 = smov 32  }
  0x4f   :  { %1033 = vmatpush3.bf16.msra.mxu1 %v1441_v6 }
  0x50   :  { %1009 = vmatpush3.bf16.msra.mxu0 %v1114_v2  ;;  %1038 = vmatprep.subr.bf16.mxu1 %v1321_v0 }
  0x51   :  { %1010 = vmatprep.subr.bf16.mxu0 %v1115_v3 }
  0x52   :  { %1035 = vmatmul.mubr.bf16.vlgmr.msra.gmra.mrb[0].mxu1 %v1323_v10 }
  0x53   :  { %1039 = vmatpush3.bf16.msra.mxu1 %v1438_v4  ;;  %1042 = vmatprep.mubr.msk.bf16.mxu1 %vm1322_vm0, %v1321_v0 }
  0x54   :  { %1011 = vmatpush3.bf16.msra.mxu0 %v1115_v3  ;;  %1040 = vmatprep.subr.bf16.mxu1 %v1321_v0 }
  0x55   :  { %1012 = vmatprep.subr.bf16.mxu0 %v1116_v5 }
  0x57   :  { %1041 = vmatpush3.bf16.msra.mxu1 %v1441_v6 }
  0x58   :  { %1013 = vmatpush3.bf16.msra.mxu0 %v1116_v5  ;;  %1046 = vmatprep.subr.bf16.mxu1 %v1321_v0 }
  0x59   :  { %1014 = vmatprep.subr.bf16.mxu0 %v1117_v8 }
  0x5c   :  { %1015 = vmatpush3.bf16.msra.mxu0 %v1117_v8 }
  0x5d   :  { %1016 = vmatprep.subr.bf16.mxu0 %v1118_v9 }
  0x60   :  { %1017 = vmatpush3.bf16.msra.mxu0 %v1118_v9 }
  0x61   :  { %1018 = vmatprep.subr.bf16.mxu0 %v1119_v11 }
  0x64   :  { %1019 = vmatpush3.bf16.msra.mxu0 %v1119_v11 }
  0x65   :  { %1020 = vmatprep.subr.bf16.mxu0 %v1121_v12 }
  0x68   :  { %1021 = vmatpush3.bf16.msra.mxu0 %v1121_v12 }
  0x69   :  { %1070 = vmatprep.subr.bf16.mxu0 %v1321_v0 }
  0x6b   :  { %1023 = vmatmul.mubr.bf16.vlgmr.msra.gmra.mrb[0].mxu0 %v1124_v13 }
  0x6c   :  { %1071 = vmatpush3.bf16.msra.mxu0 %v1438_v4 }
  0x6d   :  { %1072 = vmatprep.subr.bf16.mxu0 %v1321_v0 }
  0x70   :  { %1073 = vmatpush3.bf16.msra.mxu0 %v1441_v6 }
  0x71   :  { %1086 = vmatprep.subr.bf16.mxu0 %v1321_v0 }
 0x125   :  { %v302_v14 = vpop.f32.mrb[0].mxu1 }
 0x126   :  { %v1036_v15 = vpop.f32.mrb[1].mxu1 }
 0x127   :  { %v305_v16 = vpop.f32.mrb[2].mxu1 }
 0x128   :  { %v1037_v17 = vpop.f32.mrb[3].mxu1 }
 0x13e   :  { %v1462_v19 = vpop.f32.mrb[0].mxu0 }
 0x13f   :  { %v217_v20 = vpop.f32.mrb[1].mxu0  ;;  %v226_v61 = vadd.f32 %v1462_v19, %v1460_v18 }
 0x140   :  { %v218_v21 = vadd.f32 %v1460_v18, %v217_v20  ;;  %v1465_v22 = vpop.f32.mrb[2].mxu0 }
 0x141   :  { %v220_v23 = vpop.f32.mrb[3].mxu0 }
 0x142   :  { %v308_v24 = vadd.f32 %v302_v14, %v218_v21  ;;  %v221_v40 = vadd.f32 %v1460_v18, %v220_v23  ;;  %v229_v23 = vadd.f32 %v1465_v22, %v1460_v18 }
 0x144   :  { %1129 = vtanh.f32 %v308_v24  ;;  %v947_v26 = vmul.f32 -1.442695, %v308_v24 }
 0x146   :  { %1131 = vpow2.f32 %v947_v26 }
 0x14e   :  { %v1130_v25 = vpop.eup %1129 }
 0x14f   :  { %318 = vrot.lane.b32.xlu0 %v1130_v25, %s1317_s9 }
 0x150   :  { %v1132_v27 = vpop.eup %1131 }
 0x151   :  { %v312_v28 = vadd.f32 1.0, %v1132_v27 }
 0x153   :  { %1133 = vrcp.f32 %v312_v28 }
 0x15d   :  { %v1134_v29 = vpop.eup %1133 }
 0x15e   :  { %v316_v32 = vmul.f32 0.0, %v1134_v29 }
 0x1c1   :  { %v319_v30 = vpop.permute.xlu0 %318 }
 0x1c2   :  { %v321_v31 = vmul.f32 %v1134_v29, %v319_v30 }
 0x1c4   :  { %323 = vrot.lane.b32.xlu0 %v321_v31, %s1324_s2 }
 0x236   :  { %v324_v33 = vpop.permute.xlu0 %323 }
 0x237   :  { %v326_v34 = vadd.f32 %v324_v33, %v316_v32 }
 0x239   :  { %1135 = vtanh.f32 %v326_v34 }
 0x243   :  { %v1136_v35 = vpop.eup %1135 }
 0x244   :  { %329 = vrot.lane.b32.xlu1 %v1136_v35, %s1317_s9 }
 0x2b6   :  { %v330_v36 = vpop.permute.xlu1 %329 }
 0x2b7   :  { %v332_v37 = vmul.f32 %v1134_v29, %v330_v36 }
 0x2b9   :  { %v333_v38 = vpack.c.bf16 %v332_v37, %v332_v37 }
 0x2bb   :  { %335 = vrot.lane.b32.xlu1 %v333_v38, %s1324_s2  ;;  %v1125_v38 = vld [vmem:[#allocation2 + $0x10] sm:$0xff]  }
 0x2bc   :  { %1026 = vmatprep.mubr.bf16.mxu0 %v1125_v38 }
 0x32d   :  { %v336_v39 = vpop.permute.xlu1 %335 }
 0x32e   :  { %1043 = vmatmul.mubr.msk.bf16.vlgmr.msra.gmra.mrb[4].mxu1 %vm264_vm1, %v336_v39  ;;  %v1126_v39 = vld [vmem:[#allocation2 + $0x18] sm:$0xff]  }
 0x32f   :  { %1047 = vmatpush3.bf16.msra.mxu1 %v1438_v4  ;;  %1050 = vmatprep.mubr.msk.bf16.mxu1 %vm1322_vm0, %v1321_v0 }
 0x330   :  { %1048 = vmatprep.subr.bf16.mxu1 %v1321_v0  ;;  %1027 = vmatmul.mubr.bf16.gmra.mrb[4].mxu0 %v1126_v39 }
 0x331   :  { %1074 = vmatprep.mubr.msk.bf16.mxu0 %vm1322_vm0, %v1321_v0 }
 0x333   :  { %1049 = vmatpush3.bf16.msra.mxu1 %v1441_v6 }
 0x334   :  { %1054 = vmatprep.subr.bf16.mxu1 %v1321_v0 }
 0x401   :  { %v374_v41 = vpop.f32.mrb[4].mxu1 }
 0x402   :  { %v380_v42 = vadd.f32 %v374_v41, %v221_v40  ;;  %v1044_v43 = vpop.f32.mrb[5].mxu1 }
 0x403   :  { %v377_v44 = vpop.f32.mrb[6].mxu1 }
 0x404   :  { %1137 = vtanh.f32 %v380_v42  ;;  %v1045_v45 = vpop.f32.mrb[7].mxu1  ;;  %v949_v47 = vmul.f32 -1.442695, %v380_v42  ;;  %v1511_v44 = vpop.f32.mrb[4].mxu0 }
 0x405   :  { %v233_v45 = vpop.f32.mrb[5].mxu0 }
 0x406   :  { %1139 = vpow2.f32 %v949_v47 }
 0x40e   :  { %v1138_v46 = vpop.eup %1137 }
 0x40f   :  { %390 = vrot.lane.b32.xlu0 %v1138_v46, %s1317_s9  ;;  %v1513_v46 = vpop.f32.mrb[6].mxu0 }
 0x410   :  { %v1140_v48 = vpop.eup %1139  ;;  %v236_v47 = vpop.f32.mrb[7].mxu0 }
 0x411   :  { %v384_v49 = vadd.f32 1.0, %v1140_v48 }
 0x413   :  { %1141 = vrcp.f32 %v384_v49  ;;  %v234_v49 = vadd.f32 %v1460_v18, %v233_v45 }
 0x41d   :  { %v1142_v50 = vpop.eup %1141 }
 0x41e   :  { %v388_v53 = vmul.f32 %v1142_v50, %v326_v34 }
 0x481   :  { %v391_v51 = vpop.permute.xlu0 %390 }
 0x482   :  { %v393_v52 = vmul.f32 %v1142_v50, %v391_v51 }
 0x484   :  { %395 = vrot.lane.b32.xlu1 %v393_v52, %s1324_s2 }
 0x4f6   :  { %v396_v54 = vpop.permute.xlu1 %395 }
 0x4f7   :  { %v398_v55 = vadd.f32 %v396_v54, %v388_v53 }
 0x4f9   :  { %1143 = vtanh.f32 %v398_v55 }
 0x503   :  { %v1144_v56 = vpop.eup %1143 }
 0x504   :  { %401 = vrot.lane.b32.xlu0 %v1144_v56, %s1317_s9 }
 0x576   :  { %v402_v57 = vpop.permute.xlu0 %401 }
 0x577   :  { %v404_v58 = vmul.f32 %v1142_v50, %v402_v57 }
 0x579   :  { %v405_v59 = vpack.c.bf16 %v404_v58, %v404_v58 }
 0x57b   :  { %407 = vrot.lane.b32.xlu1 %v405_v59, %s1324_s2 }
 0x5ed   :  { %v408_v60 = vpop.permute.xlu1 %407 }
 0x5ee   :  { %1051 = vmatmul.mubr.msk.bf16.vlgmr.msra.gmra.mrb[8].mxu1 %vm264_vm1, %v408_v60 }
 0x5ef   :  { %1055 = vmatpush3.bf16.msra.mxu1 %v1438_v4  ;;  %1058 = vmatprep.mubr.msk.bf16.mxu1 %vm1322_vm0, %v1321_v0 }
 0x5f0   :  { %1056 = vmatprep.subr.bf16.mxu1 %v1321_v0 }
 0x5f3   :  { %1057 = vmatpush3.bf16.msra.mxu1 %v1441_v6 }
 0x5f4   :  { %1062 = vmatprep.subr.bf16.mxu1 %v1321_v0 }
 0x6c1   :  { %v446_v62 = vpop.f32.mrb[8].mxu1 }
 0x6c2   :  { %v452_v63 = vadd.f32 %v446_v62, %v226_v61  ;;  %v1052_v1 = vpop.f32.mrb[9].mxu1 }
 0x6c3   :  { %v449_v2 = vpop.f32.mrb[10].mxu1 }
 0x6c4   :  { %1145 = vtanh.f32 %v452_v63  ;;  %v1053_v3 = vpop.f32.mrb[11].mxu1  ;;  %v951_v7 = vmul.f32 -1.442695, %v452_v63 }
 0x6c6   :  { %1147 = vpow2.f32 %v951_v7 }
 0x6ce   :  { %v1146_v5 = vpop.eup %1145 }
 0x6cf   :  { %462 = vrot.lane.b32.xlu0 %v1146_v5, %s1317_s9 }
 0x6d0   :  { %v1148_v8 = vpop.eup %1147 }
 0x6d1   :  { %v456_v9 = vadd.f32 1.0, %v1148_v8 }
 0x6d3   :  { %1149 = vrcp.f32 %v456_v9  ;;  %v237_v9 = vadd.f32 %v1460_v18, %v236_v47 }
 0x6dd   :  { %v1150_v10 = vpop.eup %1149 }
 0x6de   :  { %v460_v13 = vmul.f32 %v1150_v10, %v398_v55 }
 0x741   :  { %v463_v11 = vpop.permute.xlu0 %462 }
 0x742   :  { %v465_v12 = vmul.f32 %v1150_v10, %v463_v11 }
 0x744   :  { %467 = vrot.lane.b32.xlu1 %v465_v12, %s1324_s2 }
 0x7b6   :  { %v468_v14 = vpop.permute.xlu1 %467 }
 0x7b7   :  { %v470_v15 = vadd.f32 %v468_v14, %v460_v13 }
 0x7b9   :  { %1151 = vtanh.f32 %v470_v15 }
 0x7c3   :  { %v1152_v16 = vpop.eup %1151 }
 0x7c4   :  { %473 = vrot.lane.b32.xlu0 %v1152_v16, %s1317_s9 }
 0x836   :  { %v474_v17 = vpop.permute.xlu0 %473 }
 0x837   :  { %v476_v19 = vmul.f32 %v1150_v10, %v474_v17 }
 0x839   :  { %v477_v20 = vpack.c.bf16 %v476_v19, %v476_v19 }
 0x83b   :  { %479 = vrot.lane.b32.xlu1 %v477_v20, %s1324_s2 }
 0x8ad   :  { %v480_v21 = vpop.permute.xlu1 %479 }
 0x8ae   :  { %1059 = vmatmul.mubr.msk.bf16.vlgmr.msra.gmra.mrb[12].mxu1 %vm264_vm1, %v480_v21 }
 0x8af   :  { %1063 = vmatpush3.bf16.msra.mxu1 %v1438_v4  ;;  %1066 = vmatprep.mubr.msk.bf16.mxu1 %vm1322_vm0, %v1321_v0 }
 0x8b0   :  { %1064 = vmatprep.subr.bf16.mxu1 %v1321_v0 }
 0x8b3   :  { %1065 = vmatpush3.bf16.msra.mxu1 %v1441_v6 }
 0x8b4   :  { %1078 = vmatprep.subr.bf16.mxu1 %v1321_v0 }
 0x981   :  { %v518_v24 = vpop.f32.mrb[12].mxu1 }
 0x982   :  { %v524_v25 = vadd.f32 %v518_v24, %v229_v23  ;;  %v1060_v26 = vpop.f32.mrb[13].mxu1 }
 0x983   :  { %v521_v27 = vpop.f32.mrb[14].mxu1 }
 0x984   :  { %1153 = vtanh.f32 %v524_v25  ;;  %v1061_v28 = vpop.f32.mrb[15].mxu1  ;;  %v953_v30 = vmul.f32 -1.442695, %v524_v25 }
 0x986   :  { %1155 = vpow2.f32 %v953_v30  ;;  %v242_v30 = vadd.f32 %v1511_v44, %v1460_v18 }
 0x98e   :  { %v1154_v29 = vpop.eup %1153 }
 0x98f   :  { %534 = vrot.lane.b32.xlu0 %v1154_v29, %s1317_s9 }
 0x990   :  { %v1156_v31 = vpop.eup %1155 }
 0x991   :  { %v528_v32 = vadd.f32 1.0, %v1156_v31 }
 0x993   :  { %1157 = vrcp.f32 %v528_v32 }
 0x99d   :  { %v1158_v33 = vpop.eup %1157 }
 0x99e   :  { %v532_v22 = vmul.f32 %v1158_v33, %v470_v15 }
 0xa01   :  { %v535_v34 = vpop.permute.xlu0 %534 }
 0xa02   :  { %v537_v35 = vmul.f32 %v1158_v33, %v535_v34 }
 0xa04   :  { %539 = vrot.lane.b32.xlu1 %v537_v35, %s1324_s2 }
 0xa76   :  { %v540_v36 = vpop.permute.xlu1 %539 }
 0xa77   :  { %v542_v37 = vadd.f32 %v540_v36, %v532_v22 }
 0xa79   :  { %1159 = vtanh.f32 %v542_v37 }
 0xa83   :  { %v1160_v40 = vpop.eup %1159 }
 0xa84   :  { %545 = vrot.lane.b32.xlu0 %v1160_v40, %s1317_s9 }
 0xaf6   :  { %v546_v41 = vpop.permute.xlu0 %545 }
 0xaf7   :  { %v548_v42 = vmul.f32 %v1158_v33, %v546_v41 }
 0xaf9   :  { %v549_v43 = vpack.c.bf16 %v548_v42, %v548_v42 }
 0xafb   :  { %551 = vrot.lane.b32.xlu1 %v549_v43, %s1324_s2 }
 0xb6d   :  { %v552_v48 = vpop.permute.xlu1 %551 }
 0xb6e   :  { %1067 = vmatmul.mubr.msk.bf16.vlgmr.msra.gmra.mrb[16].mxu1 %vm264_vm1, %v552_v48 }
 0xb6f   :  { %1079 = vmatpush3.bf16.msra.mxu1 %v1438_v4  ;;  %1082 = vmatprep.mubr.msk.bf16.mxu1 %vm1322_vm0, %v1321_v0 }
 0xb70   :  { %1080 = vmatprep.subr.bf16.mxu1 %v1321_v0 }
 0xb73   :  { %1081 = vmatpush3.bf16.msra.mxu1 %v1441_v6 }
 0xb74   :  { %1094 = vmatprep.subr.bf16.mxu1 %v1321_v0 }
 0xc41   :  { %v590_v50 = vpop.f32.mrb[16].mxu1 }
 0xc42   :  { %v596_v51 = vadd.f32 %v590_v50, %v234_v49  ;;  %v1068_v52 = vpop.f32.mrb[17].mxu1 }
 0xc43   :  { %v593_v53 = vpop.f32.mrb[18].mxu1 }
 0xc44   :  { %1161 = vtanh.f32 %v596_v51  ;;  %v1069_v54 = vpop.f32.mrb[19].mxu1  ;;  %v955_v56 = vmul.f32 -1.442695, %v596_v51  ;;  %v245_v51 = vadd.f32 %v1513_v46, %v1460_v18 }
 0xc46   :  { %1163 = vpow2.f32 %v955_v56 }
 0xc4e   :  { %v1162_v55 = vpop.eup %1161 }
 0xc4f   :  { %606 = vrot.lane.b32.xlu0 %v1162_v55, %s1317_s9 }
 0xc50   :  { %v1164_v57 = vpop.eup %1163 }
 0xc51   :  { %v600_v58 = vadd.f32 1.0, %v1164_v57 }
 0xc53   :  { %1165 = vrcp.f32 %v600_v58 }
 0xc5d   :  { %v1166_v59 = vpop.eup %1165 }
 0xc5e   :  { %v604_v62 = vmul.f32 %v1166_v59, %v542_v37 }
 0xcc1   :  { %v607_v60 = vpop.permute.xlu0 %606 }
 0xcc2   :  { %v609_v61 = vmul.f32 %v1166_v59, %v607_v60 }
 0xcc4   :  { %611 = vrot.lane.b32.xlu1 %v609_v61, %s1324_s2 }
 0xd36   :  { %v612_v63 = vpop.permute.xlu1 %611 }
 0xd37   :  { %v614_v1 = vadd.f32 %v612_v63, %v604_v62 }
 0xd39   :  { %1167 = vtanh.f32 %v614_v1 }
 0xd43   :  { %v1168_v2 = vpop.eup %1167 }
 0xd44   :  { %617 = vrot.lane.b32.xlu0 %v1168_v2, %s1317_s9  ;;  %v1127_v2 = vld [vmem:[#allocation8] sm:$0xff]  }
 0xdb6   :  { %v618_v3 = vpop.permute.xlu0 %617 }
 0xdb7   :  { %v620_v5 = vmul.f32 %v1166_v59, %v618_v3  ;;  %v1128_v3 = vld [vmem:[#allocation8 + $0x8] sm:$0xff]  }
 0xdb9   :  { %v621_v7 = vpack.c.bf16 %v620_v5, %v620_v5 }
 0xdbb   :  { %623 = vrot.lane.b32.xlu1 %v621_v7, %s1324_s2 }
 0xe2d   :  { %v624_v8 = vpop.permute.xlu1 %623 }
 0xe2e   :  { %1075 = vmatmul.mubr.msk.bf16.vlgmr.msra.gmra.mrb[8].mxu0 %vm264_vm1, %v624_v8 }
 0xe2f   :  { %1087 = vmatpush3.bf16.msra.mxu0 %v1438_v4  ;;  %1090 = vmatprep.mubr.msk.bf16.mxu0 %vm1322_vm0, %v1321_v0 }
 0xe30   :  { %1088 = vmatprep.subr.bf16.mxu0 %v1321_v0 }
 0xe33   :  { %1089 = vmatpush3.bf16.msra.mxu0 %v1441_v6 }
 0xf01   :  { %v662_v10 = vpop.f32.mrb[8].mxu0 }
 0xf02   :  { %v668_v11 = vadd.f32 %v662_v10, %v237_v9  ;;  %v1076_v12 = vpop.f32.mrb[9].mxu0 }
 0xf03   :  { %v665_v13 = vpop.f32.mrb[10].mxu0  ;;  %v962_v12 = vld [vmem:[%s1576_s5] ss:$0 sm:$0xff] }
 0xf04   :  { %1169 = vtanh.f32 %v668_v11  ;;  %v1077_v14 = vpop.f32.mrb[11].mxu0  ;;  %v957_v16 = vmul.f32 -1.442695, %v668_v11 }
 0xf06   :  { %1171 = vpow2.f32 %v957_v16 }
 0xf0e   :  { %v1170_v15 = vpop.eup %1169 }
 0xf0f   :  { %678 = vrot.lane.b32.xlu0 %v1170_v15, %s1317_s9 }
 0xf10   :  { %v1172_v4 = vpop.eup %1171 }
 0xf11   :  { %v672_v17 = vadd.f32 1.0, %v1172_v4 }
 0xf13   :  { %1173 = vrcp.f32 %v672_v17 }
 0xf1d   :  { %v1174_v19 = vpop.eup %1173 }
 0xf1e   :  { %v676_v6 = vmul.f32 %v1174_v19, %v614_v1 }
 0xf81   :  { %v679_v20 = vpop.permute.xlu0 %678 }
 0xf82   :  { %v681_v21 = vmul.f32 %v1174_v19, %v679_v20 }
 0xf84   :  { %683 = vrot.lane.b32.xlu1 %v681_v21, %s1324_s2 }
 0xff6   :  { %v684_v23 = vpop.permute.xlu1 %683 }
 0xff7   :  { %v686_v24 = vadd.f32 %v684_v23, %v676_v6 }
 0xff9   :  { %1175 = vtanh.f32 %v686_v24 }
0x1003   :  { %v1176_v25 = vpop.eup %1175 }
0x1004   :  { %689 = vrot.lane.b32.xlu0 %v1176_v25, %s1317_s9 }
0x1076   :  { %v690_v26 = vpop.permute.xlu0 %689 }
0x1077   :  { %v692_v27 = vmul.f32 %v1174_v19, %v690_v26 }
0x1079   :  { %v693_v28 = vpack.c.bf16 %v692_v27, %v692_v27 }
0x107b   :  { %695 = vrot.lane.b32.xlu1 %v693_v28, %s1324_s2 }
0x10ed   :  { %v696_v29 = vpop.permute.xlu1 %695 }
0x10ee   :  { %1083 = vmatmul.mubr.msk.bf16.vlgmr.msra.gmra.mrb[20].mxu1 %vm264_vm1, %v696_v29 }
0x10ef   :  { %1098 = vmatprep.mubr.msk.bf16.mxu1 %vm1322_vm0, %v1321_v0  ;;  %1095 = vmatpush3.bf16.msra.mxu1 %v1127_v2 }
0x10f0   :  { %1096 = vmatprep.subr.bf16.mxu1 %v1321_v0 }
0x10f3   :  { %1097 = vmatpush3.bf16.msra.mxu1 %v1128_v3 }
0x11c1   :  { %v734_v31 = vpop.f32.mrb[20].mxu1 }
0x11c2   :  { %v740_v32 = vadd.f32 %v734_v31, %v242_v30  ;;  %v1084_v33 = vpop.f32.mrb[21].mxu1 }
0x11c3   :  { %v737_v34 = vpop.f32.mrb[22].mxu1 }
0x11c4   :  { %1177 = vtanh.f32 %v740_v32  ;;  %v1085_v35 = vpop.f32.mrb[23].mxu1  ;;  %v959_v36 = vmul.f32 -1.442695, %v740_v32 }
0x11c6   :  { %1179 = vpow2.f32 %v959_v36 }
0x11ce   :  { %v1178_v22 = vpop.eup %1177 }
0x11cf   :  { %750 = vrot.lane.b32.xlu0 %v1178_v22, %s1317_s9 }
0x11d0   :  { %v1180_v37 = vpop.eup %1179 }
0x11d1   :  { %v744_v38 = vadd.f32 1.0, %v1180_v37 }
0x11d3   :  { %1181 = vrcp.f32 %v744_v38 }
0x11dd   :  { %v1182_v39 = vpop.eup %1181 }
0x11de   :  { %v748_v42 = vmul.f32 %v1182_v39, %v686_v24 }
0x1241   :  { %v751_v40 = vpop.permute.xlu0 %750 }
0x1242   :  { %v753_v41 = vmul.f32 %v1182_v39, %v751_v40 }
0x1244   :  { %755 = vrot.lane.b32.xlu1 %v753_v41, %s1324_s2 }
0x12b6   :  { %v756_v43 = vpop.permute.xlu1 %755 }
0x12b7   :  { %v758_v44 = vadd.f32 %v756_v43, %v748_v42 }
0x12b9   :  { %1183 = vtanh.f32 %v758_v44 }
0x12c3   :  { %v1184_v45 = vpop.eup %1183 }
0x12c4   :  { %761 = vrot.lane.b32.xlu0 %v1184_v45, %s1317_s9 }
0x1336   :  { %v762_v47 = vpop.permute.xlu0 %761 }
0x1337   :  { %v764_v48 = vmul.f32 %v1182_v39, %v762_v47 }
0x1339   :  { %v765_v49 = vpack.c.bf16 %v764_v48, %v764_v48 }
0x133b   :  { %767 = vrot.lane.b32.xlu1 %v765_v49, %s1324_s2 }
0x13ad   :  { %v768_v50 = vpop.permute.xlu1 %767 }
0x13ae   :  { %1091 = vmatmul.mubr.msk.bf16.vlgmr.msra.gmra.mrb[12].mxu0 %vm264_vm1, %v768_v50 }
0x1481   :  { %v806_v52 = vpop.f32.mrb[12].mxu0 }
0x1482   :  { %v812_v53 = vadd.f32 %v806_v52, %v245_v51  ;;  %v1092_v54 = vpop.f32.mrb[13].mxu0 }
0x1483   :  { %v809_v55 = vpop.f32.mrb[14].mxu0 }
0x1484   :  { %1185 = vtanh.f32 %v812_v53  ;;  %v1093_v56 = vpop.f32.mrb[15].mxu0  ;;  %v961_v58 = vmul.f32 -1.442695, %v812_v53 }
0x1486   :  { %1187 = vpow2.f32 %v961_v58 }
0x148e   :  { %v1186_v57 = vpop.eup %1185 }
0x148f   :  { %822 = vrot.lane.b32.xlu0 %v1186_v57, %s1317_s9 }
0x1490   :  { %v1188_v59 = vpop.eup %1187 }
0x1491   :  { %v816_v60 = vadd.f32 1.0, %v1188_v59 }
0x1493   :  { %1189 = vrcp.f32 %v816_v60 }
0x149d   :  { %v1190_v61 = vpop.eup %1189 }
0x149e   :  { %v820_v18 = vmul.f32 %v1190_v61, %v758_v44 }
0x1501   :  { %v823_v62 = vpop.permute.xlu0 %822 }
0x1502   :  { %v825_v63 = vmul.f32 %v1190_v61, %v823_v62 }
0x1504   :  { %827 = vrot.lane.b32.xlu1 %v825_v63, %s1324_s2 }
0x1576   :  { %v828_v46 = vpop.permute.xlu1 %827 }
0x1577   :  { %v830_v1 = vadd.f32 %v828_v46, %v820_v18 }
0x1579   :  { %1191 = vtanh.f32 %v830_v1 }
0x1583   :  { %v1192_v5 = vpop.eup %1191 }
0x1584   :  { %833 = vrot.lane.b32.xlu0 %v1192_v5, %s1317_s9  ;;  %s1325_s9 = smov [#allocation10]  }
0x1585   :  { %s921_s23 = sshll.u32 %s1325_s9, 4  ;;  %s922_s23 = int_to_ptr.vmem [resolvable:$true] %s921_s23 }
0x1586   :  { %s1285_s25 = scalar_lea.vmem %s922_s23, 128  ;;  %p1290_p5 = scmp.lt.s32.totalorder %s922_s23, %s922_s23 }
0x1587   :  { %p1286_p4 = scmp.ne.s32.totalorder %s922_s23, %s1285_s25  ;;  %p1291_p6 = scmp.lt.s32.totalorder %s1285_s25, %s1285_s25 }
0x1589   :  { %p1292_p7 = por %p1291_p6, %p1290_p5 }
0x158b   :  { %p1293_p8 = pnand %p1292_p7, %p1286_p4 }
0x15f6   :  { %v834_v7 = vpop.permute.xlu0 %833 }
0x15f7   :  { %v836_v8 = vmul.f32 %v1190_v61, %v834_v7 }
0x15f9   :  { %v837_v9 = vmax.f32 %v836_v8, 0.0 }
0x15fb   :  { %v838_v10 = vpack.c.bf16 %v837_v9, %v837_v9 }
0x15fd   :  { %851 = vrot.lane.b32.xlu1 %v838_v10, %s1324_s2 }
0x166f   :  { %v852_v11 = vpop.permute.xlu1 %851 }
0x1670   :  { %1099 = vmatmul.mubr.msk.bf16.vlgmr.msra.gmra.mrb[24].mxu1 %vm264_vm1, %v852_v11 }
0x1743   :  { %v902_v13 = vpop.f32.mrb[24].mxu1 }
0x1744   :  { %v903_v14 = vadd.f32 %v962_v12, %v902_v13  ;;  %v1100_v0 = vpop.f32.mrb[25].mxu1 }
0x1745   :  { %v905_v15 = vpop.f32.mrb[26].mxu1 }
0x1746   :  { %v966_v16 = vmul.f32 -1.442695, %v903_v14  ;;  %v1101_v4 = vpop.f32.mrb[27].mxu1 }
0x1748   :  { %1193 = vpow2.f32 %v966_v16 }
0x1752   :  { %v1194_v17 = vpop.eup %1193 }
0x1753   :  { %v911_v19 = vadd.f32 1.0, %v1194_v17 }
0x1755   :  { %1195 = vrcp.f32 %v911_v19 }
0x175f   :  { %v1196_v20 = vpop.eup %1195 }
0x1760   :  { %914 = vst [vmem:[#allocation10] sm:$0xff] %v1196_v20 }
0x1761   :  { %1296 = shalt.err (!%p1293_p8)
}
0x1762   :  { %s1297_s27 = scalar_lea.hbm %s1577_s6, 128 }
0x1763   :  { %p1298_p9 = scmp.ne.s32.totalorder %s1577_s6, %s1297_s27  ;;  %p1301_p10 = scmp.lt.u32.totalorder %s1297_s27, %s1577_s6 }
0x1765   :  { %p1303_p11 = pnand %p1301_p10, %p1298_p9 }
0x1767   :  { %1306 = shalt.err (!%p1303_p11)
}
0x1768   :  { %924 = dma.vmem_to_hbm [thread:$0]  %s922_s23, 128, %s1577_s6, [#allocation4]  }
0x1769   :  { %1313 = dma.done.wait [#allocation4], 128  }
0x176a   :  { %1314 = vsyncadd [#allocation4], 4294967168 }
0x176b   :  { %928 = vsyncpa [#allocation3], 1 }
0x176c   :  { %929 = vsyncpa [#allocation6], 1 }
0x176d   :  { %930 = vsyncpa [#allocation9], 1 }
0x176e   :  { %931 = vsyncpa [#allocation4], 1 }

</bundles_post_ra>
